<compile_context>
chip_gen: v5e
topology: v5e:2x2
jax: 0.10.0
libtpu: 0.0.40
codegen_flags: <defaults>
</compile_context>

<pallas_src>
import functools

import jax
import jax.numpy as jnp
from jax import lax
from jax.experimental import pallas as pl
from jax.experimental.pallas import tpu as pltpu


def _round_up(x, m):
    return (x + m - 1) // m * m


def _pick_tm(M, tm_target):
    """Largest M-tile that divides M exactly (no pad / no ragged tile), is sublane-aligned,
    and leaves >= 2 grid steps so v7x's two TensorCores both get work.

    Preference: multiples of 16 (bf16 packed sublane tile), then multiples of 8; a tile
    that is not a divisor of M is never returned.  Falls back to a single full-M tile
    (block == full array dim is always legal) when no such divisor exists.
    """
    limit = min(tm_target, M)
    for align in (16, 8):
        start = limit - limit % align
        for cand in range(start, align - 1, -align):
            if M % cand == 0 and M // cand >= 2:
                return cand
    return M


def _proj_kernel(x_ref, w_ref, b_ref, o_ref):
    # x_ref: (tm, K) bf16, w_ref: (K, Ep) bf16, b_ref: (1, Ep) f32, o_ref: (tm, Ep) bf16.
    # f32 accumulation on the MXU, f32 bias add, cast to the (bf16) output only at the store.
    acc = jnp.dot(x_ref[...], w_ref[...], preferred_element_type=jnp.float32)
    o_ref[...] = (acc + b_ref[...]).astype(o_ref.dtype)


def tubelet_projection_gemm(x_mat, w_mat, bias, *, out_dtype=jnp.bfloat16):
    """x_mat: (M, K) bf16, w_mat: (K, E) bf16, bias: (E,) -> (M, E) out_dtype."""
    M, K = x_mat.shape
    Kw, E = w_mat.shape
    assert K == Kw, "x/w contraction dims must match"

    # Generation-aware budgets (v7x: 64 MiB VMEM, 2 TCs; v5e/v6e: 128 MiB, 1 TC).
    try:
        vmem_phys = int(getattr(pltpu.get_tpu_info(), "vmem_capacity_bytes", 64 << 20))
    except Exception:  # pragma: no cover - conservative fallback if query unavailable
        vmem_phys = 64 << 20
    tm_target = 1024 if vmem_phys >= (96 << 20) else 512

    # Lane-align only E (weight/bias pads are tiny; keeps output stores lane-dense).
    # K is deliberately NOT padded: the X block uses the full K dim (always legal) and a
    # pad would rewrite the whole X matrix in HBM.
    Ep = _round_up(E, 128)
    tm = _pick_tm(M, tm_target)
    grid_m = M // tm

    out_bytes = jnp.dtype(out_dtype).itemsize
    w_p = w_mat if Ep == E else jnp.pad(w_mat, ((0, 0), (0, Ep - E)))
    b_p = bias.astype(jnp.float32)
    if Ep != E:
        b_p = jnp.pad(b_p, (0, Ep - E))
    b_p = b_p.reshape(1, Ep)

    # VMEM budget: double-buffered x/out tiles + weight/bias (constant index -> DMA'd once,
    # but two buffers are still allocated), with margin.  Capped at 50% of physical VMEM.
    vmem_need = (2 * tm * K * 2          # x tiles (bf16)
                 + 2 * tm * Ep * out_bytes  # out tiles
                 + 2 * K * Ep * 2        # weight (bf16)
                 + 2 * Ep * 4)           # bias (f32)
    vmem_limit = int(min(max(2 * vmem_need + (1 << 20), 16 << 20), vmem_phys // 2))

    # NOTE: for very large embed dims (K*Ep*2 of tens of MiB) one would add a second
    # "parallel" grid axis over 128/256-wide E tiles; ViViT-scale dims keep the weight
    # comfortably resident, so a single M-grid with the full-E block is the cheaper layout.
    out = pl.pallas_call(
        _proj_kernel,
        out_shape=jax.ShapeDtypeStruct((M, Ep), out_dtype),
        grid_spec=pltpu.PrefetchScalarGridSpec(
            num_scalar_prefetch=0,
            grid=(grid_m,),
            in_specs=[
                pl.BlockSpec((tm, K), lambda i: (i, 0)),
                # Weight/bias block index is constant across the grid -> fetched once,
                # resident in VMEM for the whole kernel.
                pl.BlockSpec((K, Ep), lambda i: (0, 0)),
                pl.BlockSpec((1, Ep), lambda i: (0, 0)),
            ],
            out_specs=pl.BlockSpec((tm, Ep), lambda i: (i, 0)),
        ),
        compiler_params=pltpu.CompilerParams(
            dimension_semantics=("parallel",),
            vmem_limit_bytes=vmem_limit,
            # The X producer chain is now fusion-friendly (bf16 cast -> reshape ->
            # transpose -> reshape, no pad); this hint lets XLA fuse it into the input
            # DMA instead of a separate HBM round trip where supported.
            allow_input_fusion=[True, False, False],
        ),
        cost_estimate=pl.CostEstimate(
            flops=2 * M * K * Ep,
            bytes_accessed=M * K * 2 + K * Ep * 2 + Ep * 4 + M * Ep * out_bytes,
            transcendentals=0,
        ),
    )(x_mat, w_p, b_p)

    if Ep != E:
        out = out[:, :E]
    return out


def tubelet_embeddings_forward(pixel_values, weight, bias, patch_size,
                               channels_last=False, out_dtype=jnp.bfloat16):
    """
    pixel_values: (B, C, T, H, W)  float32
    weight:       (E, C, pt, ph, pw)   (PyTorch Conv3d weight layout)
    bias:         (E,)
    returns:      (B, E, T', H', W')  (PyTorch Conv3d semantics), or (B, T', H', W', E)
                  if channels_last=True (recommended for the usual token-flatten consumer:
                  it skips an extra, lane-hostile HBM permute of the output).
    Output dtype defaults to bf16 (the GEMM operands are bf16 anyway); pass
    out_dtype=jnp.float32 for f32-typed parity with PyTorch.
    """
    B, C, T, H, W = pixel_values.shape
    pt, ph, pw = patch_size
    E = weight.shape[0]
    Tp, Hp, Wp = T // pt, H // ph, W // pw
    K = C * pt * ph * pw

    # bf16 BEFORE the 8-D im2col transpose: if the transpose materializes in HBM it does so
    # at half the bytes.  Flatten order (C, pt, ph, pw) matches the Conv3d weight layout.
    x = pixel_values.astype(jnp.bfloat16).reshape(B, C, Tp, pt, Hp, ph, Wp, pw)
    x = jnp.transpose(x, (0, 2, 4, 6, 1, 3, 5, 7))  # (B, T', H', W', C, pt, ph, pw)
    x_mat = x.reshape(B * Tp * Hp * Wp, K)

    w_mat = weight.astype(jnp.bfloat16).reshape(E, K).T  # (K, E)

    out_mat = tubelet_projection_gemm(x_mat, w_mat, bias, out_dtype=out_dtype)  # (M, E)

    out = out_mat.reshape(B, Tp, Hp, Wp, E)
    if channels_last:
        return out
    return jnp.transpose(out, (0, 4, 1, 2, 3))  # (B, E, T', H', W')  PyTorch parity


if __name__ == "__main__":
    # Small, consistent shapes: video_size=(T,H,W)=(4,16,16), patch_size=(2,2,2),
    # num_channels=4, embed_dim=32, batch=2.
    B, C, T, H, W = 2, 4, 4, 16, 16
    patch_size = (2, 2, 2)
    E = 32

    key = jax.random.PRNGKey(0)
    k_x, k_w, k_b = jax.random.split(key, 3)
    pixel_values = jax.random.normal(k_x, (B, C, T, H, W), dtype=jnp.float32)
    weight = jax.random.normal(k_w, (E, C) + patch_size, dtype=jnp.float32) * 0.02
    bias = jax.random.normal(k_b, (E,), dtype=jnp.float32) * 0.02

    # Default path: PyTorch Conv3d (NCTHW) semantics.
    fwd = jax.jit(functools.partial(tubelet_embeddings_forward, patch_size=patch_size))
    out = jax.block_until_ready(fwd(pixel_values, weight, bias))

    # Recommended consumer path: channels-last, no trailing permute.
    fwd_cl = jax.jit(functools.partial(
        tubelet_embeddings_forward, patch_size=patch_size, channels_last=True))
    out_cl = jax.block_until_ready(fwd_cl(pixel_values, weight, bias))

    # Reference: XLA Conv3d (stride == kernel, no padding).  Tolerance loosened vs pure f32
    # because GEMM operands and the stored output are bf16 (accumulation stays f32).
    ref = lax.conv_general_dilated(
        pixel_values, weight,
        window_strides=patch_size, padding="VALID",
        dimension_numbers=("NCDHW", "OIDHW", "NCDHW"),
    ) + bias.reshape(1, E, 1, 1, 1)

    assert out.shape == ref.shape == (B, E, T // 2, H // 2, W // 2), (out.shape, ref.shape)
    err = float(jnp.max(jnp.abs(out.astype(jnp.float32) - ref)))
    assert jnp.allclose(out.astype(jnp.float32), ref, atol=3e-2, rtol=3e-2), err

    ref_cl = jnp.transpose(ref, (0, 2, 3, 4, 1))
    assert out_cl.shape == ref_cl.shape, (out_cl.shape, ref_cl.shape)
    err_cl = float(jnp.max(jnp.abs(out_cl.astype(jnp.float32) - ref_cl)))
    assert jnp.allclose(out_cl.astype(jnp.float32), ref_cl, atol=3e-2, rtol=3e-2), err_cl

    print("KERNEL_OK")
</pallas_src>

<mosaic_0001>
module attributes {stable_mosaic.version = 11 : i64} {
  func.func @_proj_kernel(%arg0: i32, %arg1: memref<128x32xbf16, #tpu.memory_space<vmem>>, %arg2: memref<32x128xbf16, #tpu.memory_space<vmem>>, %arg3: memref<1x128xf32, #tpu.memory_space<vmem>>, %arg4: memref<128x128xbf16, #tpu.memory_space<vmem>>) attributes {dimension_semantics = [#tpu.dimension_semantics<parallel>], iteration_bounds = array<i64: 2>, scalar_prefetch = 0 : i64, scratch_operands = 0 : i64, tpu.core_type = #tpu.core_type<tc>, window_params = [{transform_indices = @transform_0, window_bounds = array<i64: 128, 32>}, {pipeline_mode = #tpu.pipeline_mode<synchronous>, transform_indices = @transform_1, window_bounds = array<i64: 32, 128>}, {pipeline_mode = #tpu.pipeline_mode<synchronous>, transform_indices = @transform_2, window_bounds = array<i64: 1, 128>}, {transform_indices = @transform_3, window_bounds = array<i64: 128, 128>}]} {
    %c0 = arith.constant 0 : index
    %c0_0 = arith.constant 0 : index
    %0 = vector.load %arg1[%c0, %c0_0] : memref<128x32xbf16, #tpu.memory_space<vmem>>, vector<128x32xbf16>
    %c0_1 = arith.constant 0 : index
    %c0_2 = arith.constant 0 : index
    %1 = vector.load %arg2[%c0_1, %c0_2] : memref<32x128xbf16, #tpu.memory_space<vmem>>, vector<32x128xbf16>
    %cst = arith.constant dense<0.000000e+00> : vector<128x128xf32>
    %2 = tpu.matmul %0, %1, %cst {dimension_numbers = #tpu.dot_dimension_numbers<[1], [0], [0], [1], [0, 0, 1, 1], [], []>} : vector<128x32xbf16>, vector<32x128xbf16>, vector<128x128xf32> -> vector<128x128xf32>
    %c0_3 = arith.constant 0 : index
    %c0_4 = arith.constant 0 : index
    %3 = vector.load %arg3[%c0_3, %c0_4] : memref<1x128xf32, #tpu.memory_space<vmem>>, vector<1x128xf32>
    %4 = vector.broadcast %3 : vector<1x128xf32> to vector<128x128xf32>
    %5 = arith.addf %2, %4 : vector<128x128xf32>
    %6 = arith.truncf %5 : vector<128x128xf32> to vector<128x128xbf16>
    %c0_5 = arith.constant 0 : index
    %c0_6 = arith.constant 0 : index
    %7 = vector.load %arg4[%c0_5, %c0_6] : memref<128x128xbf16, #tpu.memory_space<vmem>>, vector<128x128xbf16>
    tpu.vector_store %arg4[%c0_5, %c0_6], %6 {strides = array<i32>} : memref<128x128xbf16, #tpu.memory_space<vmem>>, vector<128x128xbf16>,
    return
  }
  func.func @transform_0(%arg0: i32) -> (i32, i32) {
    %c0_i32 = arith.constant 0 : i32
    %c0_i32_0 = arith.constant 0 : i32
    return %arg0, %c0_i32 : i32, i32
  }
  func.func @transform_1(%arg0: i32) -> (i32, i32) {
    %c0_i32 = arith.constant 0 : i32
    %c0_i32_0 = arith.constant 0 : i32
    %c0_i32_1 = arith.constant 0 : i32
    return %c0_i32, %c0_i32_0 : i32, i32
  }
  func.func @transform_2(%arg0: i32) -> (i32, i32) {
    %c0_i32 = arith.constant 0 : i32
    %c0_i32_0 = arith.constant 0 : i32
    %c0_i32_1 = arith.constant 0 : i32
    return %c0_i32, %c0_i32_0 : i32, i32
  }
  func.func @transform_3(%arg0: i32) -> (i32, i32) {
    %c0_i32 = arith.constant 0 : i32
    %c0_i32_0 = arith.constant 0 : i32
    return %arg0, %c0_i32 : i32, i32
  }
}

</mosaic_0001>

<bundles_post_ra>
// kernel: tubelet_embeddings_forward.1
= control target key start
LH: loop header
LB: loop body
LE: loop exit
PB: predicated region body
PF: predicated region fallthrough
CT: control target
= control target key end

     0   :  { %8 = vsyncpa [#allocation3], 0  ;;  %s801_s0 = inlined_call_operand.vmem [shape: bf16[256,32], index: 0, kind: input, shape index: {}]   ;;  %s802_s1 = inlined_call_operand.vmem [shape: bf16[32,128], index: 1, kind: input, shape index: {}]   ;;  %s803_s2 = inlined_call_operand.vmem [shape: f32[1,128], index: 2, kind: input, shape index: {}]   ;;  %s804_s3 = inlined_call_operand.hbm [shape: bf16[256,128], index: 3, kind: output, shape index: {}]  }
   0x1   :  { %10 = vsyncpa [#allocation3 + $0x1], 0  ;;  %s685_s12 = smov 0   ;;  %s687_s13 = smov 0  }
   0x2   :  { %s689_s14 = smov 0   ;;  %s691_s15 = smov 0  }
   0x3 LB: > { %s706_s16 = sadd.s32 4294967295, %s661_s15   ;;  %s433_s17 = sadd.s32 4294967294, %s661_s15   ;;  %s661_s15 = sphi %s691_s15, %s810_s15   ;;  %s657_s14 = sphi %s689_s14, %s809_s14   ;;  %s653_s13 = sphi %s687_s13, %s808_s13   ;;  %s649_s12 = sphi %s685_s12, %s807_s12  }
   0x4   : > { %s710_s18 = sadd.s32 1, %s661_s15   ;;  %s91_s19 = sadd.s32 1, %s657_s14 }
   0x5   : > { %s88_s20 = ssub.s32 %s661_s15, %s710_s18  ;;  %p101_p0 = scmp.ne.s32.totalorder %s657_s14, %s653_s13 }
   0x6   : > { %p89_p1 = scmp.eq.s32.totalorder %s88_s20, 0  ;;  %p102_p2 = scmp.eq.s32.totalorder %s706_s16, 1 }
   0x7   : > { %p107_p3 = scmp.ne.s32.totalorder %s653_s13, %s649_s12  ;;  %p108_p4 = scmp.eq.s32.totalorder %s433_s17, 1 }
   0x8   : > { %s721_s21 = scalar_select %p89_p1, %s657_s14, %s91_s19  }
   0x9   : > { %p723_p5 = por %p102_p2, %p101_p0  ;;  %p727_p6 = por %p108_p4, %p107_p3 }
   0xa   : > { %p436_p7 = scmp.ge.s32.totalorder %s661_s15, 1  ;;  %p141_p8 = scmp.lt.s32.totalorder %s661_s15, 3 }
   0xc   : > { %p142_p9 = pnand %p436_p7, %p141_p8 }
   0xd   : > { %s438_s26 = sshll.u32 (!%p142_p9), %s706_s16, 4  ;;  %s162_s6 = sand.u32 (!%p142_p9), 1, %s653_s13  }
   0xe   : > { %145 = sbr.rel (%p142_p9) target bundleno = 193 (0xc1), region = 32  ;;  %p166_p10 = scmp.lt.s32.totalorder (!%p142_p9), %s438_s26, 31 }
   0xf   : > { %s437_s9 = sshll.u32 (!%p142_p9), %s162_s6, 6  ;;  %s503_s11 = sshll.u32 (!%p142_p9), %s706_s16, 6 }
  0x10   : > { %s757_s10 = scalar_lea.vmem (!%p142_p9), [#allocation2], %s437_s9  ;;  %s367_s20 = scalar_lea.hbm (!%p142_p9), %s804_s3, %s503_s11 }
  0x11   : > { %s368_s24 = sshll.u32 (!%p142_p9), %s757_s10, 4  ;;  %s370_s25 = sshll.u32 (!%p142_p9), %s367_s20, 4  ;;  %s369_s24 = int_to_ptr.vmem [resolvable:$true] %s368_s24  ;;  %s371_s25 = int_to_ptr.hbm [resolvable:$true] %s370_s25 }
  0x12   : > { %s356_s16 = scalar_lea.sflag (!%p142_p9), [#allocation3], %s162_s6  ;;  %s619_s30 = scalar_lea.hbm (!%p142_p9), %s804_s3, 128 }
  0x13   : > { %v502_v0 = vld [vmem:[%s802_s1 + $0x8] sm:$0xff]  ;;  %v501_v1 = vld [vmem:[%s802_s1] sm:$0xff]  ;;  %s812_s26 = smov (!%p166_p10, %s438_s26), 31  ;;  %vm249_vm0 = vcmask 261120  }
  0x14   : > { %280 = vmatpush.bf16.msra.mxu0 %v502_v0  ;;  %551 = vmatpush.bf16.msra.mxu1 %v502_v0  ;;  %s439_s29 = sshll.u32 %s812_s26, 2  ;;  %v598_v12 = vld [vmem:[%s803_s2] ss:$0 sm:$0xff]  ;;  %s613_s26 = sshra.s32 %s371_s25, 4  ;;  %s614_s26 = int_to_ptr.hbm [resolvable:$true] %s613_s26 }
  0x15   : > { %552 = vmatpush.bf16.msra.mxu2 %v502_v0  ;;  %553 = vmatpush.bf16.msra.mxu3 %v502_v0  ;;  %s169_s5 = scalar_lea.vmem %s801_s0, %s439_s29  ;;  %s615_s27 = scalar_lea.hbm %s614_s26, 64 }
  0x16   : > { %v493_v2 = vld [vmem:[%s169_s5] sm:$0xff]  ;;  %v495_v3 = vld [vmem:[%s169_s5 + $0x10] sm:$0xff]  ;;  %v494_v6 = vld [vmem:[%s169_s5 + $0x8] sm:$0xff]  ;;  %p616_p11 = scmp.ne.s32.totalorder %s614_s26, %s615_s27  ;;  %p620_p0 = scmp.lt.s32.totalorder %s614_s26, %s804_s3 }
  0x17   : > { %v497_v4 = vld [vmem:[%s169_s5 + $0x20] sm:$0xff]  ;;  %v499_v5 = vld [vmem:[%s169_s5 + $0x30] sm:$0xff]  ;;  %v496_v7 = vld [vmem:[%s169_s5 + $0x18] sm:$0xff]  ;;  %p621_p1 = scmp.lt.s32.totalorder %s619_s30, %s615_s27 }
  0x18   : > { %281 = vmatpush.bf16.msra.mxu0 %v501_v1  ;;  %554 = vmatpush.bf16.msra.mxu1 %v501_v1  ;;  %v498_v8 = vld [vmem:[%s169_s5 + $0x28] sm:$0xff]  ;;  %v500_v9 = vld [vmem:[%s169_s5 + $0x38] sm:$0xff]  ;;  %p617_p12 = pnand %p616_p11, %p723_p5 }
  0x19   : > { %555 = vmatpush.bf16.msra.mxu2 %v501_v1  ;;  %556 = vmatpush.bf16.msra.mxu3 %v501_v1  ;;  %p622_p2 = por %p621_p1, %p620_p0 }
  0x1a   : > { %p618_p13 = pneg %p617_p12 }
  0x1b   : > { %480 = vmatmul.msk.bf16.vlgmr.msra.gmra.mxu0 %vm249_vm0, %v493_v2  ;;  %482 = vmatmul.msk.bf16.vlgmr.msra.gmra.mxu1 %vm249_vm0, %v495_v3 }
  0x1c   : > { %484 = vmatmul.msk.bf16.vlgmr.msra.gmra.mxu2 %vm249_vm0, %v497_v4  ;;  %486 = vmatmul.msk.bf16.vlgmr.msra.gmra.mxu3 %vm249_vm0, %v499_v5  ;;  %p623_p3 = pnand %p622_p2, %p618_p13 }
  0x2b   : > { %481 = vmatmul.msk.bf16.gmra.mxu0 %vm249_vm0, %v494_v6  ;;  %483 = vmatmul.msk.bf16.gmra.mxu1 %vm249_vm0, %v496_v7 }
  0x2c   : > { %485 = vmatmul.msk.bf16.gmra.mxu2 %vm249_vm0, %v498_v8  ;;  %487 = vmatmul.msk.bf16.gmra.mxu3 %vm249_vm0, %v500_v9 }
  0x98   : > { %v283_v10 = vpop.f32.mrf.mxu0  ;;  %v293_v11 = vpop.f32.mrf.mxu1 }
  0x99   : > { %v284_v17 = vadd.f32 %v598_v12, %v283_v10  ;;  %v294_v18 = vadd.f32 %v598_v12, %v293_v11 }
  0x9f   : > { %v303_v13 = vpop.f32.mrf.mxu2  ;;  %v313_v14 = vpop.f32.mrf.mxu3 }
  0xa0   : > { %v285_v15 = vpop.f32.mrf.mxu0  ;;  %v295_v16 = vpop.f32.mrf.mxu1  ;;  %v304_v25 = vadd.f32 %v598_v12, %v303_v13  ;;  %v314_v26 = vadd.f32 %v598_v12, %v313_v14 }
  0xa1   : > { %v286_v19 = vadd.f32 %v598_v12, %v285_v15  ;;  %v296_v20 = vadd.f32 %v598_v12, %v295_v16 }
  0xa3   : > { %v507_v21 = vpack.c.bf16 %v286_v19, %v284_v17  ;;  %v517_v22 = vpack.c.bf16 %v296_v20, %v294_v18 }
  0xa5   : > { %508 = vst [vmem:[%s757_s10] sm:$0xff] %v507_v21  }
  0xa6   : > { %545 = vst [vmem:[%s757_s10 + $0x10] sm:$0xff] %v517_v22  }
  0xa7   : > { %v305_v23 = vpop.f32.mrf.mxu2  ;;  %v315_v24 = vpop.f32.mrf.mxu3 }
  0xa8   : > { %v306_v27 = vadd.f32 %v598_v12, %v305_v23  ;;  %v316_v28 = vadd.f32 %v598_v12, %v315_v24  ;;  %v288_v29 = vpop.f32.mrf.mxu0  ;;  %v298_v30 = vpop.f32.mrf.mxu1 }
  0xa9   : > { %v289_v37 = vadd.f32 %v598_v12, %v288_v29  ;;  %v299_v38 = vadd.f32 %v598_v12, %v298_v30 }
  0xaa   : > { %v527_v31 = vpack.c.bf16 %v306_v27, %v304_v25  ;;  %v537_v32 = vpack.c.bf16 %v316_v28, %v314_v26 }
  0xac   : > { %547 = vst [vmem:[%s757_s10 + $0x20] sm:$0xff] %v527_v31  }
  0xad   : > { %549 = vst [vmem:[%s757_s10 + $0x30] sm:$0xff] %v537_v32  }
  0xaf   : > { %v308_v33 = vpop.f32.mrf.mxu2  ;;  %v318_v34 = vpop.f32.mrf.mxu3 }
  0xb0   : > { %v290_v35 = vpop.f32.mrf.mxu0  ;;  %v300_v36 = vpop.f32.mrf.mxu1  ;;  %v309_v45 = vadd.f32 %v598_v12, %v308_v33  ;;  %v319_v46 = vadd.f32 %v598_v12, %v318_v34 }
  0xb1   : > { %v291_v39 = vadd.f32 %v598_v12, %v290_v35  ;;  %v301_v40 = vadd.f32 %v598_v12, %v300_v36 }
  0xb3   : > { %v512_v41 = vpack.c.bf16 %v291_v39, %v289_v37  ;;  %v522_v42 = vpack.c.bf16 %v301_v40, %v299_v38 }
  0xb5   : > { %544 = vst [vmem:[%s757_s10 + $0x8] sm:$0xff] %v512_v41  }
  0xb6   : > { %546 = vst [vmem:[%s757_s10 + $0x18] sm:$0xff] %v522_v42  }
  0xb7   : > { %v310_v43 = vpop.f32.mrf.mxu2  ;;  %v320_v44 = vpop.f32.mrf.mxu3 }
  0xb8   : > { %v311_v47 = vadd.f32 %v598_v12, %v310_v43  ;;  %v321_v48 = vadd.f32 %v598_v12, %v320_v44 }
  0xba   : > { %v532_v49 = vpack.c.bf16 %v311_v47, %v309_v45  ;;  %v542_v50 = vpack.c.bf16 %v321_v48, %v319_v46 }
  0xbc   : > { %548 = vst [vmem:[%s757_s10 + $0x28] sm:$0xff] %v532_v49  }
  0xbd   : > { %550 = vst [vmem:[%s757_s10 + $0x38] sm:$0xff] %v542_v50  }
  0xbe   : > { %626 = shalt.err (!%p623_p3)
}
  0xbf   : > { %s663_s6 = smov 64   ;;  %s664_s7 = smov 4  }
  0xc0   : > { %557 = dma.vmem_to_hbm [thread:$0]  (%p723_p5), %s369_s24, 1024, %s371_s25, %s356_s16, %s663_s6, %s663_s6, %s664_s7  }
  0xc1 PF: > { %p563_p4 = scmp.ge.s32.totalorder %s661_s15, 2  ;;  %s385_s8 = sand.u32 1, %s649_s12  }
  0xc2   : > { %s386_s9 = scalar_lea.sflag [#allocation3], %s385_s8 }
  0xc3   : > { %p560_p7 = pnand %p563_p4, %p727_p6 }
  0xc5   : > { %p561_p8 = pneg %p560_p7 }
  0xc7   : > { %644 = dma.done.wait (%p561_p8), %s386_s9, 1024  }
  0xc8   : > { %646 = vsyncadd (%p561_p8), %s386_s9, 4294966272  ;;  %p13_p9 = scmp.ge.s32.totalorder %s710_s18, 4   ;;  %s807_s12 = smov %s653_s13 }
  0xc9   : > { %s808_s13 = smov %s657_s14  ;;  %s809_s14 = smov %s721_s21 }
  0xca   : > { %s810_s15 = smov %s710_s18  ;;  %15 = sbr.rel (!%p13_p9) target bundleno = 3 (0x3), region = 67 }
  0xcf   :  { %392 = vsyncpa [#allocation3], 1 }
  0xd0   :  { %394 = vsyncpa [#allocation3 + $0x1], 1 }

</bundles_post_ra>
